<compile_context>
chip_gen: v7x
topology: tpu7x:2x2x1
jax: 0.10.0
libtpu: 0.0.40
codegen_flags: <defaults>
</compile_context>

<pallas_src>
import jax
import jax.numpy as jnp
from jax import lax
from jax.experimental import pallas as pl
from jax.experimental.pallas import tpu as pltpu


def _lmi_h2_kernel(scal_ref, ab_ref, c_ref, p_ref, out_ref):
    """Processes a whole (Bt, ...) batch tile per grid step."""
    bt = out_ref.shape[0]
    nx = p_ref.shape[-1]
    nu = out_ref.shape[-1] - nx

    neg_inv_gamma = scal_ref[0]   # -1 / gamma  (precomputed in the wrapper)
    nu_param = scal_ref[1]        # self.nu     (H2 norm from the SDP solve)

    # symetrizeP_() with the output negation folded in:  Psn = -P_s
    P = p_ref[...]
    Psn = -0.5 * (P + jnp.transpose(P, (0, 2, 1)))

    # TODO(synk): torch.linalg.eig SDP-definiteness assertions have no Pallas
    # equivalent; they only raise on bad parameters and never change the value.

    # One fused MXU matmul per instance:  Y = (-P_s) @ [A | B]
    #   Y[:, :, :nx] = -P_s A   (= -X),    Y[:, :, nx:] = -P_s B (= -M12)
    Y = jnp.einsum('bij,bjk->bik', Psn, ab_ref[...],
                   preferred_element_type=jnp.float32)
    Yx = Y[:, :, :nx]
    M12n = Y[:, :, nx:]

    # -(1/gamma) C^T C  (scale the small operand C, not the nx x nx product)
    C = c_ref[...]
    CtCn = jnp.einsum('bki,bkj->bij', C * neg_inv_gamma, C,
                      preferred_element_type=jnp.float32)

    # Top-left block of -M:  -(X + X^T + (1/g) C^T C)
    M11n = Yx + jnp.transpose(Yx, (0, 2, 1)) + CtCn
    # Bottom-left block of -M:  -M12^T  (P_s symmetric -> just a transpose)
    M21n = jnp.transpose(M12n, (0, 2, 1))

    # Bottom-right block of -M:  +nu * I_{nu}  (built once per batch block)
    row = lax.broadcasted_iota(jnp.int32, (nu, nu), 0)
    col = lax.broadcasted_iota(jnp.int32, (nu, nu), 1)
    eye_nu = jnp.where(row == col, nu_param, jnp.float32(0.0))
    eye_b = jnp.broadcast_to(eye_nu, (bt, nu, nu))

    # Two lane-dense row-band stores (no overlapping masked sub-block stores).
    out_ref[:, :nx, :] = jnp.concatenate([M11n, M12n], axis=-1)
    out_ref[:, nx:, :] = jnp.concatenate([M21n, eye_b], axis=-1)


def lmi_h2_forward_batched(A, B, C, P, gamma, nu_param, *, block_batch=256):
    """Batched forward: A (bs,nx,nx), B (bs,nx,nu), C (bs,ny,nx), P (bs,nx,nx).
    Returns -M of shape (bs, nx+nu, nx+nu)."""
    A = jnp.asarray(A, jnp.float32)
    B = jnp.asarray(B, jnp.float32)
    C = jnp.asarray(C, jnp.float32)
    P = jnp.asarray(P, jnp.float32)

    bs, nx, _ = A.shape
    nu = B.shape[-1]
    ny = C.shape[-2]
    n = nx + nu

    # Fuse A and B into one operand so the kernel does a single matmul.
    AB = jnp.concatenate([A, B], axis=-1)                       # (bs, nx, n)

    # Batch tile size: ~32 KB / instance double-buffered -> Bt=256 is ~8 MiB,
    # safe under v7x's 32 MiB scoped VMEM; v5e/v6e could go larger.
    Bt = max(1, int(min(block_batch, bs)))
    bs_pad = ((bs + Bt - 1) // Bt) * Bt
    pad = bs_pad - bs
    if pad:
        AB = jnp.pad(AB, ((0, pad), (0, 0), (0, 0)))
        C = jnp.pad(C, ((0, pad), (0, 0), (0, 0)))
        P = jnp.pad(P, ((0, pad), (0, 0), (0, 0)))

    scal = jnp.stack([-1.0 / jnp.asarray(gamma, jnp.float32),
                      jnp.asarray(nu_param, jnp.float32)])

    out = pl.pallas_call(
        _lmi_h2_kernel,
        out_shape=jax.ShapeDtypeStruct((bs_pad, n, n), jnp.float32),
        grid=(bs_pad // Bt,),
        in_specs=[
            pl.BlockSpec(memory_space=pltpu.MemorySpace.SMEM),      # [-1/g, nu]
            pl.BlockSpec((Bt, nx, n), lambda b: (b, 0, 0)),         # [A | B]
            pl.BlockSpec((Bt, ny, nx), lambda b: (b, 0, 0)),        # C
            pl.BlockSpec((Bt, nx, nx), lambda b: (b, 0, 0)),        # P
        ],
        out_specs=pl.BlockSpec((Bt, n, n), lambda b: (b, 0, 0)),
        compiler_params=pltpu.CompilerParams(
            dimension_semantics=("parallel",)),
    )(scal, AB, C, P)

    return out[:bs]


def lmi_h2_forward(A, B, C, P, gamma, nu_param):
    """Single-instance forward (matches the PyTorch module's forward())."""
    out = lmi_h2_forward_batched(A[None], B[None], C[None], P[None],
                                 gamma, nu_param, block_batch=1)
    return out[0]


def _reference(A, B, C, P, gamma, nu_param):
    """Pure-JAX reference of the PyTorch forward (for verification)."""
    Ps = 0.5 * (P + P.T)
    nu = B.shape[1]
    M11 = A.T @ Ps + Ps @ A + (1.0 / gamma) * (C.T @ C)
    M12 = Ps @ B
    M22 = -nu_param * jnp.eye(nu, dtype=jnp.float32)
    M = jnp.concatenate(
        [jnp.concatenate([M11, M12], axis=1),
         jnp.concatenate([M12.T, M22], axis=1)], axis=0)
    return -M


if __name__ == "__main__":
    # Small state-space dimensions consistent with the module:
    #   A: (nx, nx), B: (nx, nu), C: (ny, nx), P: (nx, nx)
    nx, nu, ny = 32, 8, 4
    batch = 8

    key = jax.random.PRNGKey(0)
    kA, kB, kC, kP = jax.random.split(key, 4)

    # Deterministic synthetic parameters (the real module solves an SDP with
    # MOSEK to get P and nu; here we just build symmetric SPD-like P's).
    A = 0.1 * jax.random.normal(kA, (batch, nx, nx), dtype=jnp.float32) \
        - 0.5 * jnp.eye(nx, dtype=jnp.float32)
    B = jax.random.normal(kB, (batch, nx, nu), dtype=jnp.float32)
    C = jax.random.normal(kC, (batch, ny, nx), dtype=jnp.float32)
    Q = jax.random.normal(kP, (batch, nx, nx), dtype=jnp.float32)
    P = jnp.einsum("bij,bkj->bik", Q, Q) / nx \
        + 0.1 * jnp.eye(nx, dtype=jnp.float32)                      # SPD

    gamma = jnp.float32(1.5)      # (forward references self.gamma)
    nu_param = jnp.float32(2.0)   # self.nu from the H2 SDP solve

    # Batched, batch-blocked path (Bt=4 -> 2 grid steps so both v7x TCs work).
    out_b = jax.block_until_ready(
        lmi_h2_forward_batched(A, B, C, P, gamma, nu_param, block_batch=4))
    ref_b = jax.vmap(
        lambda a, b, c, p: _reference(a, b, c, p, gamma, nu_param))(A, B, C, P)
    assert out_b.shape == (batch, nx + nu, nx + nu)
    assert jnp.allclose(out_b, ref_b, atol=1e-4, rtol=1e-4), \
        "batched mismatch vs reference"

    # Batch not divisible by the tile (exercises the padding path).
    out_odd = jax.block_until_ready(
        lmi_h2_forward_batched(A[:5], B[:5], C[:5], P[:5],
                               gamma, nu_param, block_batch=4))
    assert jnp.allclose(out_odd, ref_b[:5], atol=1e-4, rtol=1e-4), \
        "padded-batch mismatch vs reference"

    # Single-instance path (module semantics).
    out_1 = jax.block_until_ready(
        lmi_h2_forward(A[0], B[0], C[0], P[0], gamma, nu_param))
    ref_1 = _reference(A[0], B[0], C[0], P[0], gamma, nu_param)
    assert out_1.shape == (nx + nu, nx + nu)
    assert jnp.allclose(out_1, ref_1, atol=1e-4, rtol=1e-4), \
        "single mismatch vs reference"

    print("KERNEL_OK")
</pallas_src>

<mosaic_0001>
module attributes {stable_mosaic.version = 11 : i64} {
  func.func @_lmi_h2_kernel(%arg0: i32, %arg1: memref<2xf32, #tpu.memory_space<smem>>, %arg2: memref<4x32x40xf32, #tpu.memory_space<vmem>>, %arg3: memref<4x4x32xf32, #tpu.memory_space<vmem>>, %arg4: memref<4x32x32xf32, #tpu.memory_space<vmem>>, %arg5: memref<4x40x40xf32, #tpu.memory_space<vmem>>) attributes {dimension_semantics = [#tpu.dimension_semantics<parallel>], iteration_bounds = array<i64: 2>, scalar_prefetch = 0 : i64, scratch_operands = 0 : i64, tpu.core_type = #tpu.core_type<tc>, window_params = [{transform_indices = @transform_0, window_bounds = array<i64: 2>}, {transform_indices = @transform_1, window_bounds = array<i64: 4, 32, 40>}, {transform_indices = @transform_2, window_bounds = array<i64: 4, 4, 32>}, {transform_indices = @transform_3, window_bounds = array<i64: 4, 32, 32>}, {transform_indices = @transform_4, window_bounds = array<i64: 4, 40, 40>}]} {
    %c0 = arith.constant 0 : index
    %0 = memref.load %arg1[%c0] : memref<2xf32, #tpu.memory_space<smem>>
    %c1 = arith.constant 1 : index
    %1 = memref.load %arg1[%c1] : memref<2xf32, #tpu.memory_space<smem>>
    %c0_0 = arith.constant 0 : index
    %c0_1 = arith.constant 0 : index
    %c0_2 = arith.constant 0 : index
    %2 = vector.load %arg4[%c0_0, %c0_1, %c0_2] : memref<4x32x32xf32, #tpu.memory_space<vmem>>, vector<4x32x32xf32>
    %3 = tpu.transpose %2, [0, 2, 1] : vector<4x32x32xf32> -> vector<4x32x32xf32>
    %4 = arith.addf %2, %3 : vector<4x32x32xf32>
    %cst = arith.constant -5.000000e-01 : f32
    %5 = vector.broadcast %cst : f32 to vector<4x32x32xf32>
    %6 = arith.mulf %5, %4 : vector<4x32x32xf32>
    %c0_3 = arith.constant 0 : index
    %c0_4 = arith.constant 0 : index
    %c0_5 = arith.constant 0 : index
    %7 = vector.load %arg2[%c0_3, %c0_4, %c0_5] : memref<4x32x40xf32, #tpu.memory_space<vmem>>, vector<4x32x40xf32>
    "tpu.trace_start"() <{level = 10 : i32, message = "bij,bjk->bik"}> : () -> ()
    %cst_6 = arith.constant dense<0.000000e+00> : vector<4x32x40xf32>
    %8 = tpu.matmul %6, %7, %cst_6 {dimension_numbers = #tpu.dot_dimension_numbers<[2], [1], [1], [2], [0, 0, 0, 1, 1, 2], [0], [0]>} : vector<4x32x32xf32>, vector<4x32x40xf32>, vector<4x32x40xf32> -> vector<4x32x40xf32>
    "tpu.trace_stop"() : () -> ()
    %9 = vector.extract_strided_slice %8 {offsets = [0, 0, 0], sizes = [4, 32, 32], strides = [1, 1, 1]} : vector<4x32x40xf32> to vector<4x32x32xf32>
    %10 = vector.extract_strided_slice %8 {offsets = [0, 0, 32], sizes = [4, 32, 8], strides = [1, 1, 1]} : vector<4x32x40xf32> to vector<4x32x8xf32>
    %c0_7 = arith.constant 0 : index
    %c0_8 = arith.constant 0 : index
    %c0_9 = arith.constant 0 : index
    %11 = vector.load %arg3[%c0_7, %c0_8, %c0_9] : memref<4x4x32xf32, #tpu.memory_space<vmem>>, vector<4x4x32xf32>
    %12 = vector.broadcast %0 : f32 to vector<4x4x32xf32>
    %13 = arith.mulf %11, %12 : vector<4x4x32xf32>
    "tpu.trace_start"() <{level = 10 : i32, message = "bki,bkj->bij"}> : () -> ()
    %cst_10 = arith.constant dense<0.000000e+00> : vector<4x32x32xf32>
    %14 = tpu.matmul %13, %11, %cst_10 {dimension_numbers = #tpu.dot_dimension_numbers<[1], [1], [2], [2], [0, 0, 0, 2, 1, 2], [0], [0]>} : vector<4x4x32xf32>, vector<4x4x32xf32>, vector<4x32x32xf32> -> vector<4x32x32xf32>
    "tpu.trace_stop"() : () -> ()
    %15 = tpu.transpose %9, [0, 2, 1] : vector<4x32x32xf32> -> vector<4x32x32xf32>
    %16 = arith.addf %9, %15 : vector<4x32x32xf32>
    %17 = arith.addf %16, %14 : vector<4x32x32xf32>
    %18 = tpu.transpose %10, [0, 2, 1] : vector<4x32x8xf32> -> vector<4x8x32xf32>
    %19 = tpu.iota {dimensions = array<i32: 0>} : vector<8x8xi32>
    %20 = tpu.iota {dimensions = array<i32: 1>} : vector<8x8xi32>
    %21 = arith.cmpi eq, %19, %20 : vector<8x8xi32>
    %cst_11 = arith.constant 0.000000e+00 : f32
    %22 = vector.broadcast %1 : f32 to vector<8x8xf32>
    %23 = vector.broadcast %cst_11 : f32 to vector<8x8xf32>
    %24 = arith.select %21, %22, %23 : vector<8x8xi1>, vector<8x8xf32>
    %25 = vector.shape_cast %24 : vector<8x8xf32> to vector<1x8x8xf32>
    %26 = vector.broadcast %25 : vector<1x8x8xf32> to vector<4x8x8xf32>
    %27 = tpu.concatenate %17, %10 in 2 : vector<4x32x32xf32>, vector<4x32x8xf32> -> vector<4x32x40xf32>
    %c0_12 = arith.constant 0 : index
    %c0_13 = arith.constant 0 : index
    %c0_14 = arith.constant 0 : index
    %28 = vector.load %arg5[%c0_12, %c0_13, %c0_14] : memref<4x40x40xf32, #tpu.memory_space<vmem>>, vector<4x32x40xf32>
    tpu.vector_store %arg5[%c0_12, %c0_13, %c0_14], %27 {strides = array<i32>} : memref<4x40x40xf32, #tpu.memory_space<vmem>>, vector<4x32x40xf32>,
    %29 = tpu.concatenate %18, %26 in 2 : vector<4x8x32xf32>, vector<4x8x8xf32> -> vector<4x8x40xf32>
    %c0_15 = arith.constant 0 : index
    %c32 = arith.constant 32 : index
    %c0_16 = arith.constant 0 : index
    %30 = vector.load %arg5[%c0_15, %c32, %c0_16] : memref<4x40x40xf32, #tpu.memory_space<vmem>>, vector<4x8x40xf32>
    tpu.vector_store %arg5[%c0_15, %c32, %c0_16], %29 {strides = array<i32>} : memref<4x40x40xf32, #tpu.memory_space<vmem>>, vector<4x8x40xf32>,
    return
  }
  func.func @transform_0(%arg0: i32) -> i32 {
    %c0_i32 = arith.constant 0 : i32
    %c0_i32_0 = arith.constant 0 : i32
    return %c0_i32 : i32
  }
  func.func @transform_1(%arg0: i32) -> (i32, i32, i32) {
    %c0_i32 = arith.constant 0 : i32
    %c0_i32_0 = arith.constant 0 : i32
    %c0_i32_1 = arith.constant 0 : i32
    return %arg0, %c0_i32, %c0_i32_0 : i32, i32, i32
  }
  func.func @transform_2(%arg0: i32) -> (i32, i32, i32) {
    %c0_i32 = arith.constant 0 : i32
    %c0_i32_0 = arith.constant 0 : i32
    %c0_i32_1 = arith.constant 0 : i32
    return %arg0, %c0_i32, %c0_i32_0 : i32, i32, i32
  }
  func.func @transform_3(%arg0: i32) -> (i32, i32, i32) {
    %c0_i32 = arith.constant 0 : i32
    %c0_i32_0 = arith.constant 0 : i32
    %c0_i32_1 = arith.constant 0 : i32
    return %arg0, %c0_i32, %c0_i32_0 : i32, i32, i32
  }
  func.func @transform_4(%arg0: i32) -> (i32, i32, i32) {
    %c0_i32 = arith.constant 0 : i32
    %c0_i32_0 = arith.constant 0 : i32
    %c0_i32_1 = arith.constant 0 : i32
    return %arg0, %c0_i32, %c0_i32_0 : i32, i32, i32
  }
}

</mosaic_0001>

<bundles_post_ra>
// kernel: tpu_custom_call.1
= control target key start
LH: loop header
LB: loop body
LE: loop exit
PB: predicated region body
PF: predicated region fallthrough
CT: control target
= control target key end

     0   :  { %s3189_s0 = inlined_call_operand.hbm [shape: f32[2], index: 0, kind: input, shape index: {}]   ;;  %s3190_s1 = inlined_call_operand.hbm [shape: f32[8,32,40], index: 1, kind: input, shape index: {}]   ;;  %s3191_s2 = inlined_call_operand.hbm [shape: f32[8,4,32], index: 2, kind: input, shape index: {}]   ;;  %s3192_s3 = inlined_call_operand.hbm [shape: f32[8,32,32], index: 3, kind: input, shape index: {}]   ;;  %s3193_s4 = inlined_call_operand.hbm [shape: f32[8,40,40], index: 4, kind: output, shape index: {}]  }
   0x1   :  { %3200 = sst [smem:[#allocation17_spill]] %s3189_s0 }
   0x2   :  { %3201 = sst [smem:[#allocation18_spill]] %s3191_s2 }
   0x3   :  { %9 = vsyncpa [#allocation5], 0 }
   0x4   :  { %10 = vsyncpa [#allocation3], 0 }
   0x5   :  { %12 = vsyncpa [#allocation3 + $0x1], 0 }
   0x6   :  { %13 = vsyncpa [#allocation8], 0 }
   0x7   :  { %15 = vsyncpa [#allocation8 + $0x1], 0 }
   0x8   :  { %16 = vsyncpa [#allocation4], 0 }
   0x9   :  { %18 = vsyncpa [#allocation4 + $0x1], 0  ;;  %s2514_s15 = smov 0   ;;  %s2516_s16 = smov 0  }
   0xa   :  { %s2518_s17 = smov 0   ;;  %s2520_s18 = smov 0  }
   0xb LB: > { %3202 = sst [smem:[#allocation15_spill]] %s2470_s17  ;;  %s2535_s19 = sadd.s32 1, %s2474_s18   ;;  %s2474_s18 = sphi %s2520_s18, %s3224_s18   ;;  %s2470_s17 = sphi %s2518_s17, %s3221_s17   ;;  %s2466_s16 = sphi %s2516_s16, %s3223_s16   ;;  %s2462_s15 = sphi %s2514_s15, %s3222_s15  }
   0xc   : > { %s52_s20 = sadd.s32 1, %s2470_s17  ;;  %s49_s21 = ssub.s32 %s2474_s18, %s2535_s19 }
   0xd   : > { %p3194_p0 = scmp.ne.s32.totalorder %s2470_s17, %s2466_s16  ;;  %p50_p1 = scmp.eq.s32.totalorder %s49_s21, 0 }
   0xe   : > { %p60_p2 = scmp.eq.s32.totalorder %s2474_s18, 0  ;;  %p2252_p4 = scmp.lt.s32.totalorder %s2474_s18, 2 }
   0xf   : > { %s2546_s22 = scalar_select %p50_p1, %s2470_s17, %s52_s20  }
  0x10   : > { %p61_p5 = por %p60_p2, %p3194_p0  ;;  %s2552_s23 = sand.u32 1, %s2470_s17  }
  0x11   : > { %3203 = sst [smem:[#allocation16_spill]] %s2546_s22  ;;  %s198_s24 = sand.u32 1, %s2474_s18  }
  0x12   : > { %s1988_s25 = sshll.u32 %s2552_s23, 4  ;;  %p2556_p6 = pnand %p2252_p4, %p61_p5 }
  0x13   : > { %s2044_s27 = sshll.u32 %s2474_s18, 8  ;;  %s3205_s2 = sld [smem:[#allocation18_spill]] }
  0x14   : > { %s202_s5 = scalar_lea.vmem [#allocation7], %s1988_s25  ;;  %s2568_s7 = scalar_lea.sflag [#allocation8], %s198_s24 }
  0x15   : > { %s209_s6 = sshll.u32 %s202_s5, 4  ;;  %p2574_p8 = pneg %p2556_p6  ;;  %s2566_s6 = int_to_ptr.vmem [resolvable:$true] %s209_s6 }
  0x19   : > { %s2564_s30 = scalar_lea.hbm %s3205_s2, %s2044_s27  ;;  %s2302_s12 = scalar_lea.hbm %s3205_s2, 512 }
  0x1a   : > { %s2297_s8 = scalar_lea.hbm %s2564_s30, 256  ;;  %p2303_p11 = scmp.lt.u32.totalorder %s2564_s30, %s3205_s2 }
  0x1b   : > { %p2298_p7 = scmp.ne.s32.totalorder %s2564_s30, %s2297_s8  ;;  %p2304_p12 = scmp.lt.u32.totalorder %s2302_s12, %s2297_s8 }
  0x1c   : > { %p2306_p1 = scmp.lt.u32.totalorder %s2297_s8, %s2564_s30 }
  0x1d   : > { %p2300_p9 = pnand %p2574_p8, %p2298_p7  ;;  %p2305_p13 = por %p2304_p12, %p2303_p11 }
  0x1f   : > { %p2301_p10 = pneg %p2300_p9  ;;  %p2307_p2 = por %p2306_p1, %p2305_p13 }
  0x21   : > { %p2308_p4 = pnand %p2307_p2, %p2301_p10 }
  0x23   : > { %2311 = shalt.err (!%p2308_p4)
}
  0x24   : > { %s2312_s20 = scalar_lea.vmem %s2566_s6, 256  ;;  %s2476_s21 = smov [#allocation7]  }
  0x25   : > { %p2313_p5 = scmp.ne.s32.totalorder %s2566_s6, %s2312_s20  ;;  %s2317_s24 = sshll.u32 %s2476_s21, 4  ;;  %s2318_s24 = int_to_ptr.vmem [resolvable:$false] %s2317_s24 }
  0x26   : > { %s2319_s25 = scalar_lea.vmem %s2318_s24, 512  ;;  %p2320_p3 = scmp.lt.s32.totalorder %s2566_s6, %s2318_s24 }
  0x27   : > { %p2315_p7 = pnand %p2313_p5, %p2574_p8  ;;  %p2321_p0 = scmp.lt.s32.totalorder %s2319_s25, %s2312_s20 }
  0x29   : > { %p2316_p9 = pneg %p2315_p7  ;;  %p2322_p11 = por %p2321_p0, %p2320_p3 }
  0x2b   : > { %p2323_p12 = pnand %p2322_p11, %p2316_p9 }
  0x2d   : > { %2326 = shalt.err (!%p2323_p12)
}
  0x2e   : > { %s2477_s27 = smov 64   ;;  %s2478_s28 = smov 4  }
  0x2f   : > { %2243 = dma.hbm_to_vmem [thread:$0]  (!%p2556_p6), %s2564_s30, 256, %s2566_s6, %s2568_s7, %s2477_s27, %s2477_s27, %s2478_s28  }
  0x30   : > { %s2599_s29 = sadd.s32 4294967295, %s2474_s18   ;;  %s1980_s5 = sadd.s32 4294967294, %s2474_s18  }
  0x31   : > { %p65_p0 = scmp.ne.s32.totalorder %s2466_s16, %s2462_s15  ;;  %p3196_p3 = scmp.eq.s32.totalorder %s2599_s29, 0 }
  0x32   : > { %p141_p10 = scmp.eq.s32.totalorder %s2599_s29, 1  ;;  %p147_p13 = scmp.eq.s32.totalorder %s1980_s5, 1 }
  0x33   : > { %p2608_p1 = por %p3196_p3, %p65_p0  ;;  %p1981_p2 = scmp.ge.s32.totalorder %s2474_s18, 1 }
  0x34   : > { %p3208_p4 = scmp.ne.s32.totalorder %s2470_s17, %s2466_s16  ;;  %p2620_p7 = por %p147_p13, %p65_p0 }
  0x35   : > { %s3207_s8 = scalar_select %p2608_p1, 1, 0 }
  0x36   : > { %p2616_p5 = por %p141_p10, %p3208_p4  ;;  %p154_p9 = scmp.lt.s32.totalorder %s2474_s18, 3 }
  0x37   : > { %s3210_s6 = scalar_select %p2620_p7, 1, 0 }
  0x38   : > { %s3209_s30 = scalar_select %p2616_p5, 1, 0 }
  0x39   : > { %p2625_p11 = pnand %p1981_p2, %p154_p9  ;;  %s1984_s11 = sshll.u32 %s2552_s23, 7 }
  0x3a   : > { %s2043_s12 = sshll.u32 %s2474_s18, 11  ;;  %s180_s21 = scalar_lea.vmem [#allocation6], %s1984_s11 }
  0x3b   : > { %s3211_s10 = scalar_select %p2625_p11, 1, 0 }
  0x3c   : > { %p2233_p12 = pneg %p2625_p11  ;;  %s2636_s20 = scalar_lea.hbm %s3190_s1, %s2043_s12 }
  0x3d   : > { %s188_s24 = sshll.u32 %s180_s21, 4  ;;  %s2647_s28 = scalar_lea.hbm %s3192_s3, %s2043_s12  ;;  %s2642_s24 = int_to_ptr.vmem [resolvable:$true] %s188_s24 }
  0x3e   : > { %p2234_p0 = pnand %p2233_p12, %p3196_p3  ;;  %s3212_s0 = sld [smem:[#allocation17_spill]] }
  0x40   : > { %p2329_p13 = pneg %p2234_p0 }
  0x44   : > { %s2327_s22 = scalar_lea.hbm %s3212_s0, 16 }
  0x45   : > { %p2328_p10 = scmp.ne.s32.totalorder %s3212_s0, %s2327_s22  ;;  %p2334_p9 = scmp.lt.u32.totalorder %s2327_s22, %s3212_s0 }
  0x47   : > { %p2330_p2 = pnand %p2329_p13, %p2328_p10 }
  0x49   : > { %p2331_p4 = pneg %p2330_p2 }
  0x4b   : > { %p2336_p12 = pnand %p2334_p9, %p2331_p4 }
  0x4d   : > { %2339 = shalt.err (!%p2336_p12)
}
  0x4e   : > { %s2479_s25 = smov [#allocation2]   ;;  %s177_s2 = scalar_lea.sflag [#allocation3], %s2552_s23 }
  0x4f   : > { %2236 = dma.hbm_to_smem (!%p2234_p0), %s3212_s0, 16, %s2479_s25, [#allocation5]  }
  0x50   : > { %s2340_s17 = scalar_lea.hbm %s2636_s20, 2048  ;;  %s2345_s13 = scalar_lea.hbm %s3190_s1, 4096 }
  0x51   : > { %p2341_p10 = scmp.ne.s32.totalorder %s2636_s20, %s2340_s17  ;;  %p2346_p4 = scmp.lt.u32.totalorder %s2636_s20, %s3190_s1 }
  0x52   : > { %p2347_p9 = scmp.lt.u32.totalorder %s2345_s13, %s2340_s17  ;;  %p2349_p3 = scmp.lt.u32.totalorder %s2340_s17, %s2636_s20 }
  0x53   : > { %p2343_p13 = pnand %p2341_p10, %p2574_p8 }
  0x54   : > { %p2348_p12 = por %p2347_p9, %p2346_p4 }
  0x55   : > { %p2344_p2 = pneg %p2343_p13 }
  0x56   : > { %p2350_p7 = por %p2349_p3, %p2348_p12 }
  0x58   : > { %p2351_p5 = pnand %p2350_p7, %p2344_p2 }
  0x5a   : > { %2354 = shalt.err (!%p2351_p5)
}
  0x5b   : > { %s2355_s25 = scalar_lea.vmem %s2642_s24, 2048  ;;  %s2480_s12 = smov [#allocation6]  }
  0x5c   : > { %p2356_p0 = scmp.ne.s32.totalorder %s2642_s24, %s2355_s25  ;;  %s2360_s27 = sshll.u32 %s2480_s12, 4  ;;  %s2361_s27 = int_to_ptr.vmem [resolvable:$false] %s2360_s27 }
  0x5d   : > { %s2362_s22 = scalar_lea.vmem %s2361_s27, 4096  ;;  %p2363_p1 = scmp.lt.s32.totalorder %s2642_s24, %s2361_s27 }
  0x5e   : > { %p2358_p10 = pnand %p2356_p0, %p2574_p8  ;;  %p2364_p11 = scmp.lt.s32.totalorder %s2362_s22, %s2355_s25 }
  0x60   : > { %p2359_p13 = pneg %p2358_p10  ;;  %p2365_p4 = por %p2364_p11, %p2363_p1 }
  0x62   : > { %p2366_p9 = pnand %p2365_p4, %p2359_p13 }
  0x64   : > { %2369 = shalt.err (!%p2366_p9)
}
  0x65   : > { %s2481_s17 = smov 128   ;;  %s2482_s5 = smov 8  }
  0x66   : > { %2240 = dma.hbm_to_vmem [thread:$0]  (!%p2556_p6), %s2636_s20, 2048, %s2642_s24, %s177_s2, %s2481_s17, %s2481_s17, %s2482_s5  }
  0x67   : > { %s223_s13 = scalar_lea.vmem [#allocation9], %s1984_s11  ;;  %s2370_s21 = scalar_lea.hbm %s2647_s28, 2048 }
  0x68   : > { %s231_s14 = sshll.u32 %s223_s13, 4  ;;  %p2371_p3 = scmp.ne.s32.totalorder %s2647_s28, %s2370_s21  ;;  %s2690_s14 = int_to_ptr.vmem [resolvable:$true] %s231_s14 }
  0x69   : > { %s2375_s27 = scalar_lea.hbm %s3192_s3, 4096  ;;  %p2376_p7 = scmp.lt.u32.totalorder %s2647_s28, %s3192_s3 }
  0x6a   : > { %p2373_p1 = pnand %p2371_p3, %p2574_p8  ;;  %p2377_p11 = scmp.lt.u32.totalorder %s2375_s27, %s2370_s21 }
  0x6b   : > { %p2379_p12 = scmp.lt.u32.totalorder %s2370_s21, %s2647_s28 }
  0x6c   : > { %p2374_p5 = pneg %p2373_p1  ;;  %p2378_p2 = por %p2377_p11, %p2376_p7 }
  0x6e   : > { %p2380_p0 = por %p2379_p12, %p2378_p2 }
  0x70   : > { %p2381_p10 = pnand %p2380_p0, %p2374_p5 }
  0x72   : > { %2384 = shalt.err (!%p2381_p10)
}
  0x73   : > { %s2385_s23 = scalar_lea.vmem %s2690_s14, 2048  ;;  %s2483_s11 = smov [#allocation9]  }
  0x74   : > { %p2386_p13 = scmp.ne.s32.totalorder %s2690_s14, %s2385_s23  ;;  %s2390_s20 = sshll.u32 %s2483_s11, 4  ;;  %s2391_s20 = int_to_ptr.vmem [resolvable:$false] %s2390_s20 }
  0x75   : > { %s2392_s0 = scalar_lea.vmem %s2391_s20, 4096  ;;  %p2393_p3 = scmp.lt.s32.totalorder %s2690_s14, %s2391_s20 }
  0x76   : > { %p2388_p4 = pnand %p2386_p13, %p2574_p8  ;;  %p2394_p1 = scmp.lt.s32.totalorder %s2392_s0, %s2385_s23 }
  0x78   : > { %p2389_p9 = pneg %p2388_p4  ;;  %p2395_p7 = por %p2394_p1, %p2393_p3 }
  0x7a   : > { %p2396_p11 = pnand %p2395_p7, %p2389_p9 }
  0x7c   : > { %2399 = shalt.err (!%p2396_p11)
}
  0x7d   : > { %2246 = dma.hbm_to_vmem [thread:$0]  (!%p2556_p6), %s2647_s28, 2048, %s2690_s14, %s2568_s7, %s2481_s17, %s2481_s17, %s2482_s5  }
  0x7e   : > { %p3213_p8 = scmp.ne.s32.totalorder %s3211_s10, 0 }
  0x7f   : > { %p3214_p5 = scmp.eq.s32.totalorder (!%p3213_p8), %s2599_s29, 0 }
  0x80   : > { %243 = sbr.rel (%p3213_p8) target bundleno = 859 (0x35b), region = 36 }
  0x87   : > { %2445 = dma.done.wait (%p3214_p5), [#allocation5], 16   ;;  %p3215_p2 = pmov %p3214_p5 }
  0x88   : > { %s2724_s9 = sand.u32 1, %s2466_s16   ;;  %p3216_p6 = scmp.ne.s32.totalorder %s3207_s8, 0 }
  0x89   : > { %2447 = vsyncadd (%p3215_p2), [#allocation5], 4294967280  ;;  %s1997_s26 = sshll.u32 %s2724_s9, 7  ;;  %s250_s24 = scalar_lea.sflag [#allocation3], %s2724_s9 }
  0x8a   : > { %s2728_s2 = scalar_lea.vmem [#allocation6], %s1997_s26 }
  0x8b   : > { %2449 = dma.done.wait (%p3216_p6), %s250_s24, 2048  }
  0x8c   : > { %2451 = vsyncadd (%p3216_p6), %s250_s24, 4294965248  ;;  %s258_s7 = sand.u32 1, %s2599_s29   ;;  %s1998_s10 = sshll.u32 %s2724_s9, 4 }
  0x8d   : > { %s259_s28 = scalar_lea.sflag [#allocation8], %s258_s7  ;;  %s2736_s17 = scalar_lea.vmem [#allocation7], %s1998_s10 }
  0x8e   : > { %2453 = dma.done.wait (%p3216_p6), %s259_s28, 2304  }
  0x8f   : > { %2455 = vsyncadd (%p3216_p6), %s259_s28, 4294964992  ;;  %s2742_s5 = scalar_lea.vmem [#allocation9], %s1997_s26 }
  0x90   : > { %276 = sfence }
  0x91   : > { %v2745_v0 = vld [vmem:[%s2742_s5 + $0x20] sm:$0xff]  ;;  %v2753_v2 = vld [vmem:[%s2742_s5 + $0x28] sm:$0xff]  ;;  %v2759_v4 = vld [vmem:[%s2742_s5 + $0x30] sm:$0xff]  ;;  %s311_s8 = sld [smem:[#allocation2]]  ;;  %s2000_s13 = sld [smem:[#allocation2 + $0x1]]  ;;  %v1785_v43 = vlaneseq  ;;  %vm505_vm1 = vcmask 261120  }
  0x92   : > { %v2748_v1 = vld [vmem:[%s2742_s5] sm:$0xff]  ;;  %361 = vxpose.xlu1.b32.start [1/4] (short) (narrow) %v2745_v0, 32  ;;  %v2756_v3 = vld [vmem:[%s2742_s5 + $0x8] sm:$0xff]  ;;  %v2764_v5 = vld [vmem:[%s2742_s5 + $0x10] sm:$0xff]  ;;  %s2484_s14 = smov 32   ;;  %vm948_vm2 = vcmask 1043456  }
  0x93   : > { %329 = vxpose.xlu0.b32.start [1/4] (short) (narrow) %v2748_v1, 32  ;;  %v489_v6 = vld [vmem:[%s2728_s2] sm:$0xff]  ;;  %v490_v7 = vld [vmem:[%s2728_s2 + $0x8] sm:$0xff]  ;;  %v491_v11 = vld [vmem:[%s2728_s2 + $0x10] sm:$0xff]  ;;  %v1786_v44 = vshrl.u32 %v1785_v43, 7  ;;  %v1788_v45 = vand.u32 127, %v1785_v43 }
  0x94   : > { %v2187_v8 = vpack.c.bf16 %v490_v7, %v489_v6  ;;  %v493_v9 = vld [vmem:[%s2728_s2 + $0x20] sm:$0xff]  ;;  %v494_v10 = vld [vmem:[%s2728_s2 + $0x28] sm:$0xff]  ;;  %v492_v13 = vld [vmem:[%s2728_s2 + $0x18] sm:$0xff]  ;;  %vm935_vm3 = vcmask 31744   ;;  %s2485_s21 = smov 96   ;;  %s2219_s25 = smul.u32 160, %s2724_s9 }
  0x95   : > { %v2195_v12 = vpack.c.bf16 %v494_v10, %v493_v9  ;;  %v495_v14 = vld [vmem:[%s2728_s2 + $0x30] sm:$0xff]  ;;  %v496_v15 = vld [vmem:[%s2728_s2 + $0x38] sm:$0xff]  ;;  %v2191_v16 = vpack.c.bf16 %v492_v13, %v491_v11  ;;  %v2785_v20 = vld [vmem:[%s2742_s5 + $0x60] sm:$0xff]  ;;  %vm1789_vm0 = vcmp.eq.s32.totalorder %v1786_v44, %v1788_v45  ;;  %vm1808_vm4 = vcmask 326656   ;;  %s2220_s27 = smul.u32 2560, %s2599_s29  ;;  %s1838_s29 = scalar_lea.sflag [#allocation4], %s2724_s9 }
  0x96   : > { %362 = vxpose.xlu1.b32.cont [2/4] (short) (narrow) %v2753_v2, 32  ;;  %2188 = vmatprep.subr.bf16.mxu0 %v2187_v8  ;;  %v2199_v17 = vpack.c.bf16 %v496_v15, %v495_v14  ;;  %v2777_v18 = vld [vmem:[%s2742_s5 + $0x38] sm:$0xff]  ;;  %v2788_v21 = vld [vmem:[%s2742_s5 + $0x40] sm:$0xff]  ;;  %v498_v23 = vld [vmem:[%s2728_s2 + $0x48] sm:$0xff]  ;;  %s3029_s12 = scalar_lea.vmem [#allocation10], %s2219_s25  ;;  %p3217_p0 = scmp.ne.s32.totalorder %s3209_s30, 0 }
  0x97   : > { %330 = vxpose.xlu0.b32.cont [2/4] (short) (narrow) %v2756_v3, 32  ;;  %v2780_v19 = vld [vmem:[%s2742_s5 + $0x18] sm:$0xff]  ;;  %2196 = vmatprep.subr.bf16.mxu1 %v2195_v12  ;;  %v497_v22 = vld [vmem:[%s2728_s2 + $0x40] sm:$0xff]  ;;  %v502_v26 = vld [vmem:[%s2728_s2 + $0x68] sm:$0xff]  ;;  %v898_v36 = vstv %s311_s8  ;;  %s1852_s22 = sshll.u32 %s3029_s12, 4  ;;  %s3135_s20 = scalar_lea.hbm %s3193_s4, %s2220_s27  ;;  %s3137_s22 = int_to_ptr.vmem [resolvable:$true] %s1852_s22 }
  0x98   : > { %2190 = vmatpush3.bf16.msra.mxu0 %v2187_v8  ;;  %2198 = vmatpush3.bf16.msra.mxu1 %v2195_v12  ;;  %v501_v24 = vld [vmem:[%s2728_s2 + $0x60] sm:$0xff]  ;;  %v2793_v25 = vpack.c.bf16 %v498_v23, %v497_v22  ;;  %v2801_v28 = vld [vmem:[%s2742_s5 + $0x68] sm:$0xff]  ;;  %v2811_v30 = vld [vmem:[%s2742_s5 + $0x70] sm:$0xff]  ;;  %v1790_v46 = vstv %s2000_s13  ;;  %s2400_s0 = scalar_lea.vmem %s3137_s22, 2560  ;;  %s2486_s26 = smov [#allocation10]  }
  0x99   : > { %2192 = vmatprep.subr.bf16.mxu0 %v2191_v16  ;;  %2200 = vmatprep.subr.bf16.mxu1 %v2199_v17  ;;  %v2798_v27 = vpack.c.bf16 %v502_v26, %v501_v24  ;;  %v2804_v29 = vld [vmem:[%s2742_s5 + $0x48] sm:$0xff]  ;;  %v2814_v31 = vld [vmem:[%s2742_s5 + $0x50] sm:$0xff]  ;;  %v2819_v32 = vld [vmem:[%s2742_s5 + $0x78] sm:$0xff]  ;;  %v1791_v47 = vsel %vm1789_vm0, %v1790_v46, 0.0  ;;  %p2401_p12 = scmp.ne.s32.totalorder %s3137_s22, %s2400_s0  ;;  %s2404_s24 = sshll.u32 %s2486_s26, 4  ;;  %s2405_s24 = int_to_ptr.vmem [resolvable:$false] %s2404_s24 }
  0x9a   : > { %363 = vxpose.xlu1.b32.cont [3/4] (short) (narrow) %v2759_v4, 32  ;;  %v2822_v33 = vld [vmem:[%s2742_s5 + $0x58] sm:$0xff]  ;;  %v2827_v34 = vld [vmem:[%s2736_s17] sm:$0xf]  ;;  %v2830_v35 = vld [vmem:[%s2736_s17 + $0x4] sm:$0xf]  ;;  %p2407_p4 = scmp.lt.s32.totalorder %s3137_s22, %s2405_s24 }
  0x9b   : > { %331 = vxpose.xlu0.b32.cont [3/4] (short) (narrow) %v2764_v5, 32  ;;  %v899_v37 = vmul.f32 %v898_v36, %v2827_v34  ;;  %v900_v38 = vmul.f32 %v898_v36, %v2830_v35  ;;  %v2835_v39 = vld [vmem:[%s2736_s17 + $0x8] sm:$0xf]  ;;  %v2838_v40 = vld [vmem:[%s2736_s17 + $0xc] sm:$0xf]  ;;  %v499_v54 = vld [vmem:[%s2728_s2 + $0x50] sm:$0xff]  ;;  %p2402_p10 = pnand %p2401_p12, %p3217_p0 }
  0x9c   : > { %2194 = vmatpush3.bf16.msra.mxu0 %v2191_v16  ;;  %2202 = vmatpush3.bf16.msra.mxu1 %v2199_v17  ;;  %v901_v41 = vmul.f32 %v898_v36, %v2835_v39  ;;  %v902_v42 = vmul.f32 %v898_v36, %v2838_v40  ;;  %v500_v57 = vld [vmem:[%s2728_s2 + $0x58] sm:$0xff]  ;;  %v503_v58 = vld [vmem:[%s2728_s2 + $0x70] sm:$0xff] }
  0x9d   : > { %2204 = vmatprep.subr.bf16.mxu0 %v2793_v25  ;;  %2212 = vmatprep.subr.bf16.mxu1 %v2798_v27  ;;  %v504_v59 = vld [vmem:[%s2728_s2 + $0x78] sm:$0xff]  ;;  %p2403_p13 = pneg %p2402_p10  ;;  %s2406_s2 = scalar_lea.vmem %s2405_s24, 5120 }
  0x9e   : > { %364 = vxpose.xlu1.b32.end [4/4] (short) (narrow) %v2777_v18, 32  ;;  %p2408_p9 = scmp.lt.s32.totalorder %s2406_s2, %s2400_s0 }
  0x9f   : > { %332 = vxpose.xlu0.b32.end [4/4] (short) (narrow) %v2780_v19, 32 }
  0xa0   : > { %p2409_p3 = por %p2408_p9, %p2407_p4 }
  0xa2   : > { %425 = vxpose.xlu1.b32.start [1/4] (short) (narrow) %v2785_v20, 32  ;;  %p2410_p1 = pnand %p2409_p3, %p2403_p13 }
  0xa3   : > { %393 = vxpose.xlu0.b32.start [1/4] (short) (narrow) %v2788_v21, 32 }
  0xa6   : > { %426 = vxpose.xlu1.b32.cont [2/4] (short) (narrow) %v2801_v28, 32 }
  0xa7   : > { %394 = vxpose.xlu0.b32.cont [2/4] (short) (narrow) %v2804_v29, 32 }
  0xaa   : > { %427 = vxpose.xlu1.b32.cont [3/4] (short) (narrow) %v2811_v30, 32 }
  0xab   : > { %395 = vxpose.xlu0.b32.cont [3/4] (short) (narrow) %v2814_v31, 32 }
  0xae   : > { %428 = vxpose.xlu1.b32.end [4/4] (short) (narrow) %v2819_v32, 32 }
  0xaf   : > { %396 = vxpose.xlu0.b32.end [4/4] (short) (narrow) %v2822_v33, 32 }
  0xb2   : > { %1037 = vxpose.xlu1.b32.start.end [1/1] (short) (narrow) %v900_v38, 32 }
  0xb3   : > { %903 = vxpose.xlu0.b32.start.end [1/1] (short) (narrow) %v899_v37, 32 }
  0xbf   : > { %1301 = vxpose.xlu1.b32.start.end [1/1] (short) (narrow) %v902_v42, 32 }
  0xc0   : > { %1169 = vxpose.xlu0.b32.start.end [1/1] (short) (narrow) %v901_v41, 32 }
  0xf5   : > { %1826 = vrot.lane.b32.xlu0 %v1791_v47, %s2484_s14 }
 0x112   : > { %v377_v48 = vpop.trf.xlu1 }
 0x113   : > { %v345_v49 = vpop.trf.xlu0  ;;  %v461_v50 = vadd.f32 %v377_v48, %v2745_v0  ;;  %v2207_v0 = vpack.c.bf16 %v500_v57, %v499_v54 }
 0x114   : > { %v457_v51 = vadd.f32 %v345_v49, %v2748_v1  ;;  %v2215_v1 = vpack.c.bf16 %v504_v59, %v503_v58 }
 0x115   : > { %v477_v52 = vmul.f32 -0.5, %v461_v50 }
 0x116   : > { %v473_v53 = vmul.f32 -0.5, %v457_v51  ;;  %v378_v55 = vpop.trf.xlu1 }
 0x117   : > { %v346_v56 = vpop.trf.xlu0  ;;  %v462_v60 = vadd.f32 %v378_v55, %v2753_v2  ;;  %2121 = vmatprep.mubr.msk.f32.mxu1 %vm505_vm1, %v477_v52 }
 0x118   : > { %v458_v61 = vadd.f32 %v346_v56, %v2756_v3  ;;  %2107 = vmatprep.mubr.msk.f32.mxu0 %vm505_vm1, %v473_v53 }
 0x119   : > { %v478_v62 = vmul.f32 -0.5, %v462_v60 }
 0x11a   : > { %v474_v63 = vmul.f32 -0.5, %v458_v61  ;;  %v379_v6 = vpop.trf.xlu1 }
 0x11b   : > { %v347_v7 = vpop.trf.xlu0  ;;  %v463_v8 = vadd.f32 %v379_v6, %v2759_v4  ;;  %2122 = vmatmul.mubr.msk.f32.vlgmr.msra.gmra.mrb[0].mxu1 %vm505_vm1, %v478_v62 }
 0x11c   : > { %v459_v9 = vadd.f32 %v347_v7, %v2764_v5  ;;  %2108 = vmatmul.mubr.msk.f32.vlgmr.msra.gmra.mrb[0].mxu0 %vm505_vm1, %v474_v63  ;;  %2214 = vmatpush3.bf16.msra.mxu1 %v2798_v27 }
 0x11d   : > { %2206 = vmatpush3.bf16.msra.mxu0 %v2793_v25  ;;  %v479_v2 = vmul.f32 -0.5, %v463_v8  ;;  %2216 = vmatprep.subr.bf16.mxu1 %v2215_v1 }
 0x11e   : > { %v475_v3 = vmul.f32 -0.5, %v459_v9  ;;  %2208 = vmatprep.subr.bf16.mxu0 %v2207_v0  ;;  %v380_v10 = vpop.trf.xlu1 }
 0x11f   : > { %v348_v11 = vpop.trf.xlu0  ;;  %v464_v12 = vadd.f32 %v380_v10, %v2777_v18  ;;  %2124 = vmatprep.mubr.msk.f32.mxu1 %vm505_vm1, %v479_v2 }
 0x120   : > { %v460_v4 = vadd.f32 %v348_v11, %v2780_v19  ;;  %2110 = vmatprep.mubr.msk.f32.mxu0 %vm505_vm1, %v475_v3  ;;  %2218 = vmatpush3.bf16.msra.mxu1 %v2215_v1 }
 0x121   : > { %2210 = vmatpush3.bf16.msra.mxu0 %v2207_v0  ;;  %v480_v5 = vmul.f32 -0.5, %v464_v12  ;;  %2163 = vmatprep.subr.msk.mxu1 %vm948_vm2, %v2830_v35 }
 0x122   : > { %v476_v13 = vmul.f32 -0.5, %v460_v4  ;;  %2155 = vmatprep.subr.msk.mxu0 %vm948_vm2, %v2827_v34  ;;  %v441_v14 = vpop.trf.xlu1 }
 0x123   : > { %v409_v15 = vpop.trf.xlu0  ;;  %v469_v16 = vadd.f32 %v441_v14, %v2785_v20  ;;  %2125 = vmatmul.mubr.msk.f32.gmra.mrb[2].mxu1 %vm505_vm1, %v480_v5 }
 0x124   : > { %v465_v17 = vadd.f32 %v409_v15, %v2788_v21  ;;  %2111 = vmatmul.mubr.msk.f32.gmra.mrb[2].mxu0 %vm505_vm1, %v476_v13 }
 0x125   : > { %v485_v18 = vmul.f32 -0.5, %v469_v16 }
 0x126   : > { %v481_v19 = vmul.f32 -0.5, %v465_v17  ;;  %v442_v22 = vpop.trf.xlu1 }
 0x127   : > { %v410_v23 = vpop.trf.xlu0  ;;  %v470_v24 = vadd.f32 %v442_v22, %v2801_v28  ;;  %2149 = vmatprep.mubr.msk.f32.mxu1 %vm505_vm1, %v485_v18 }
 0x128   : > { %v466_v25 = vadd.f32 %v410_v23, %v2804_v29  ;;  %2135 = vmatprep.mubr.msk.f32.mxu0 %vm505_vm1, %v481_v19 }
 0x129   : > { %v486_v26 = vmul.f32 -0.5, %v470_v24 }
 0x12a   : > { %v482_v20 = vmul.f32 -0.5, %v466_v25  ;;  %v443_v27 = vpop.trf.xlu1 }
 0x12b   : > { %v411_v21 = vpop.trf.xlu0  ;;  %2150 = vmatmul.mubr.msk.f32.vlgmr.msra.gmra.mrb[4].mxu1 %vm505_vm1, %v486_v26  ;;  %v471_v36 = vadd.f32 %v443_v27, %v2811_v30 }
 0x12c   : > { %2136 = vmatmul.mubr.msk.f32.vlgmr.msra.gmra.mrb[4].mxu0 %vm505_vm1, %v482_v20  ;;  %v467_v37 = vadd.f32 %v411_v21, %v2814_v31  ;;  %2164 = vmatpush3.msk.msra.mxu1 %vm948_vm2, %v2830_v35 }
 0x12d   : > { %2156 = vmatpush3.msk.msra.mxu0 %vm948_vm2, %v2827_v34  ;;  %v487_v28 = vmul.f32 -0.5, %v471_v36  ;;  %2179 = vmatprep.subr.msk.mxu1 %vm948_vm2, %v2838_v40 }
 0x12e   : > { %v483_v29 = vmul.f32 -0.5, %v467_v37  ;;  %2171 = vmatprep.subr.msk.mxu0 %vm948_vm2, %v2835_v39  ;;  %v444_v38 = vpop.trf.xlu1 }
 0x12f   : > { %v412_v41 = vpop.trf.xlu0  ;;  %v472_v30 = vadd.f32 %v444_v38, %v2819_v32  ;;  %2152 = vmatprep.mubr.msk.f32.mxu1 %vm505_vm1, %v487_v28 }
 0x130   : > { %v468_v31 = vadd.f32 %v412_v41, %v2822_v33  ;;  %2138 = vmatprep.mubr.msk.f32.mxu0 %vm505_vm1, %v483_v29 }
 0x131   : > { %v488_v34 = vmul.f32 -0.5, %v472_v30 }
 0x132   : > { %v484_v35 = vmul.f32 -0.5, %v468_v31  ;;  %v1053_v43 = vpop.trf.xlu1 }
 0x133   : > { %2153 = vmatmul.mubr.msk.f32.gmra.mrb[6].mxu1 %vm505_vm1, %v488_v34  ;;  %v919_v42 = vpop.trf.xlu0 }
 0x134   : > { %2139 = vmatmul.mubr.msk.f32.gmra.mrb[6].mxu0 %vm505_vm1, %v484_v35  ;;  %2165 = vmatprep.mubr.msk.f32.mxu1 %vm935_vm3, %v1053_v43 }
 0x135   : > { %2157 = vmatprep.mubr.msk.f32.mxu0 %vm935_vm3, %v919_v42 }
 0x136   : > { %v1054_v44 = vpop.trf.xlu1 }
 0x137   : > { %v920_v32 = vpop.trf.xlu0  ;;  %2166 = vmatmul.mubr.msk.f32.vlgmr.msra.gmra.mrb[8].mxu1 %vm935_vm3, %v1054_v44 }
 0x138   : > { %2158 = vmatmul.mubr.msk.f32.vlgmr.msra.gmra.mrb[8].mxu0 %vm935_vm3, %v920_v32  ;;  %2180 = vmatpush3.msk.msra.mxu1 %vm948_vm2, %v2838_v40 }
 0x139   : > { %2172 = vmatpush3.msk.msra.mxu0 %vm948_vm2, %v2835_v39 }
 0x13a   : > { %v1055_v45 = vpop.trf.xlu1 }
 0x13b   : > { %v921_v33 = vpop.trf.xlu0  ;;  %2168 = vmatprep.mubr.msk.f32.mxu1 %vm935_vm3, %v1055_v45 }
 0x13c   : > { %2160 = vmatprep.mubr.msk.f32.mxu0 %vm935_vm3, %v921_v33 }
 0x13e   : > { %v1056_v47 = vpop.trf.xlu1 }
 0x13f   : > { %v922_v46 = vpop.trf.xlu0  ;;  %2169 = vmatmul.mubr.msk.f32.gmra.mrb[10].mxu1 %vm935_vm3, %v1056_v47 }
 0x140   : > { %2161 = vmatmul.mubr.msk.f32.gmra.mrb[10].mxu0 %vm935_vm3, %v922_v46 }
 0x142   : > { %v1317_v50 = vpop.trf.xlu1 }
 0x143   : > { %v1185_v48 = vpop.trf.xlu0  ;;  %2181 = vmatprep.mubr.msk.f32.mxu1 %vm935_vm3, %v1317_v50 }
 0x144   : > { %2173 = vmatprep.mubr.msk.f32.mxu0 %vm935_vm3, %v1185_v48 }
 0x146   : > { %v1318_v51 = vpop.trf.xlu1 }
 0x147   : > { %v1186_v49 = vpop.trf.xlu0  ;;  %2182 = vmatmul.mubr.msk.f32.vlgmr.msra.gmra.mrb[12].mxu1 %vm935_vm3, %v1318_v51 }
 0x148   : > { %2174 = vmatmul.mubr.msk.f32.vlgmr.msra.gmra.mrb[12].mxu0 %vm935_vm3, %v1186_v49 }
 0x14a   : > { %v1319_v52 = vpop.trf.xlu1 }
 0x14b   : > { %v1187_v39 = vpop.trf.xlu0  ;;  %2184 = vmatprep.mubr.msk.f32.mxu1 %vm935_vm3, %v1319_v52 }
 0x14c   : > { %2176 = vmatprep.mubr.msk.f32.mxu0 %vm935_vm3, %v1187_v39 }
 0x14e   : > { %v1320_v53 = vpop.trf.xlu1 }
 0x14f   : > { %v1188_v40 = vpop.trf.xlu0  ;;  %2185 = vmatmul.mubr.msk.f32.gmra.mrb[14].mxu1 %vm935_vm3, %v1320_v53 }
 0x150   : > { %2177 = vmatmul.mubr.msk.f32.gmra.mrb[14].mxu0 %vm935_vm3, %v1188_v40 }
 0x167   : > { %v2999_v14 = vpop.permute.xlu0 %1826 }
 0x1ee   : > { %v2914_v55 = vpop.f32.mrb[0].mxu1 }
 0x1ef   : > { %v2912_v54 = vpop.f32.mrb[0].mxu0  ;;  %1619 = vrot.lane.b32.xlu0 %v2914_v55, %s2485_s21  ;;  %v2922_v57 = vpop.f32.mrb[1].mxu1 }
 0x1f0   : > { %v2916_v56 = vpop.f32.mrb[1].mxu0  ;;  %1611 = vrot.lane.b32.xlu1 %v2912_v54, %s2485_s21 }
 0x1f3   : > { %1609 = vrot.lane.b32.xlu0 %v2916_v56, %s2485_s21 }
 0x1f4   : > { %1617 = vrot.lane.b32.xlu1 %v2922_v57, %s2485_s21 }
 0x1f6   : > { %v2930_v59 = vpop.f32.mrb[2].mxu1 }
 0x1f7   : > { %v2928_v58 = vpop.f32.mrb[2].mxu0  ;;  %1623 = vrot.lane.b32.xlu0 %v2930_v59, %s2485_s21  ;;  %v2938_v61 = vpop.f32.mrb[3].mxu1 }
 0x1f8   : > { %v2932_v60 = vpop.f32.mrb[3].mxu0  ;;  %1615 = vrot.lane.b32.xlu1 %v2928_v58, %s2485_s21 }
 0x1fb   : > { %1621 = vrot.lane.b32.xlu0 %v2938_v61, %s2485_s21 }
 0x1fc   : > { %1613 = vrot.lane.b32.xlu1 %v2932_v60, %s2485_s21 }
 0x1fe   : > { %v2946_v63 = vpop.f32.mrb[4].mxu1 }
 0x1ff   : > { %v2944_v62 = vpop.f32.mrb[4].mxu0  ;;  %1635 = vrot.lane.b32.xlu0 %v2946_v63, %s2485_s21  ;;  %v2954_v1 = vpop.f32.mrb[5].mxu1 }
 0x200   : > { %v2948_v0 = vpop.f32.mrb[5].mxu0  ;;  %1627 = vrot.lane.b32.xlu1 %v2944_v62, %s2485_s21 }
 0x206   : > { %v2956_v6 = vpop.f32.mrb[6].mxu1 }
 0x207   : > { %v2958_v7 = vpop.f32.mrb[6].mxu0  ;;  %v2960_v8 = vpop.f32.mrb[7].mxu1 }
 0x208   : > { %v2962_v9 = vpop.f32.mrb[7].mxu0 }
 0x20a   : > { %v2975_v12 = vpop.f32.mrb[8].mxu1 }
 0x20b   : > { %v2965_v2 = vpop.f32.mrb[8].mxu0  ;;  %v2977_v4 = vpop.f32.mrb[9].mxu1 }
 0x20c   : > { %v1018_v3 = vpop.f32.mrb[9].mxu0 }
 0x212   : > { %v2981_v5 = vpop.f32.mrb[10].mxu1 }
 0x213   : > { %v2969_v10 = vpop.f32.mrb[10].mxu0  ;;  %v2983_v13 = vpop.f32.mrb[11].mxu1 }
 0x214   : > { %v2971_v11 = vpop.f32.mrb[11].mxu0 }
 0x21a   : > { %v3013_v26 = vpop.f32.mrb[12].mxu1 }
 0x21b   : > { %v3001_v15 = vpop.f32.mrb[12].mxu0  ;;  %v3015_v20 = vpop.f32.mrb[13].mxu1 }
 0x21c   : > { %v3003_v16 = vpop.f32.mrb[13].mxu0 }
 0x21d   : > { %1433 = vxpose.xlu0.b32.start [1/4] (short) (narrow) %v2916_v56, 32 }
 0x221   : > { %1434 = vxpose.xlu0.b32.cont [2/4] (short) (narrow) %v2912_v54, 32 }
 0x222   : > { %v3019_v21 = vpop.f32.mrb[14].mxu1 }
 0x223   : > { %v3007_v19 = vpop.f32.mrb[14].mxu0  ;;  %v3021_v36 = vpop.f32.mrb[15].mxu1 }
 0x224   : > { %v3009_v22 = vpop.f32.mrb[15].mxu0 }
 0x225   : > { %1435 = vxpose.xlu0.b32.cont [3/4] (short) (narrow) %v2932_v60, 32 }
 0x229   : > { %1465 = vxpose.xlu1.b32.start [1/4] (short) (narrow) %v2922_v57, 32  ;;  %1436 = vxpose.xlu0.b32.end [4/4] (short) (narrow) %v2928_v58, 32 }
 0x22d   : > { %1466 = vxpose.xlu1.b32.cont [2/4] (short) (narrow) %v2914_v55, 32 }
 0x231   : > { %1467 = vxpose.xlu1.b32.cont [3/4] (short) (narrow) %v2938_v61, 32 }
 0x235   : > { %1468 = vxpose.xlu1.b32.end [4/4] (short) (narrow) %v2930_v59, 32 }
 0x252   : > { %1639 = vrot.lane.b32.xlu0 %v2956_v6, %s2485_s21 }
 0x253   : > { %1625 = vrot.lane.b32.xlu1 %v2948_v0, %s2485_s21 }
 0x256   : > { %1637 = vrot.lane.b32.xlu0 %v2960_v8, %s2485_s21 }
 0x257   : > { %1633 = vrot.lane.b32.xlu1 %v2954_v1, %s2485_s21 }
 0x25b   : > { %1631 = vrot.lane.b32.xlu1 %v2958_v7, %s2485_s21 }
 0x25f   : > { %1629 = vrot.lane.b32.xlu1 %v2962_v9, %s2485_s21 }
 0x261   : > { %v1620_v17 = vpop.permute.xlu0 %1619 }
 0x262   : > { %v1612_v18 = vpop.permute.xlu1 %1611 }
 0x265   : > { %v1610_v23 = vpop.permute.xlu0 %1609 }
 0x266   : > { %v1618_v24 = vpop.permute.xlu1 %1617 }
 0x269   : > { %v1624_v25 = vpop.permute.xlu0 %1623 }
 0x26a   : > { %v1616_v37 = vpop.permute.xlu1 %1615 }
 0x26d   : > { %v1622_v27 = vpop.permute.xlu0 %1621 }
 0x26e   : > { %v1614_v38 = vpop.permute.xlu1 %1613 }
 0x271   : > { %v1636_v28 = vpop.permute.xlu0 %1635 }
 0x272   : > { %v1628_v42 = vpop.permute.xlu1 %1627 }
 0x274   : > { %1497 = vxpose.xlu0.b32.start [1/4] (short) (narrow) %v2948_v0, 32 }
 0x278   : > { %1498 = vxpose.xlu0.b32.cont [2/4] (short) (narrow) %v2944_v62, 32 }
 0x27c   : > { %1499 = vxpose.xlu0.b32.cont [3/4] (short) (narrow) %v2962_v9, 32 }
 0x280   : > { %1500 = vxpose.xlu0.b32.end [4/4] (short) (narrow) %v2958_v7, 32 }
 0x284   : > { %1689 = vxpose.xlu0.b32.start [1/4] (short) (narrow) %v1618_v24, 8 }
 0x288   : > { %1529 = vxpose.xlu1.b32.start [1/4] (short) (narrow) %v2954_v1, 32  ;;  %1690 = vxpose.xlu0.b32.cont [2/4] (short) (narrow) %v1620_v17, 8 }
 0x28c   : > { %1530 = vxpose.xlu1.b32.cont [2/4] (short) (narrow) %v2946_v63, 32  ;;  %1691 = vxpose.xlu0.b32.cont [3/4] (short) (narrow) %v1622_v27, 8 }
 0x290   : > { %1531 = vxpose.xlu1.b32.cont [3/4] (short) (narrow) %v2960_v8, 32  ;;  %1692 = vxpose.xlu0.b32.end [4/4] (short) (narrow) %v1624_v25, 8 }
 0x294   : > { %1532 = vxpose.xlu1.b32.end [4/4] (short) (narrow) %v2956_v6, 32 }
 0x298   : > { %1657 = vxpose.xlu1.b32.start [1/4] (short) (narrow) %v1610_v23, 8 }
 0x29c   : > { %1658 = vxpose.xlu1.b32.cont [2/4] (short) (narrow) %v1612_v18, 8 }
 0x29d   : > { %v1449_v29 = vpop.trf.xlu0 }
 0x29e   : > { %v1561_v41 = vadd.f32 %v1449_v29, %v2916_v56 }
 0x2a0   : > { %1659 = vxpose.xlu1.b32.cont [3/4] (short) (narrow) %v1614_v38, 8  ;;  %v1577_v30 = vadd.f32 %v1561_v41, %v1018_v3 }
 0x2a1   : > { %v1450_v31 = vpop.trf.xlu0 }
 0x2a2   : > { %v1792_v34 = vsel %vm505_vm1, %v1577_v30, %v2916_v56  ;;  %v1562_v35 = vadd.f32 %v2912_v54, %v1450_v31 }
 0x2a3   : > { %1809 = vst.msk [vmem:[%s3029_s12] sm:$0xff] %vm1808_vm4, %v1792_v34 }
 0x2a4   : > { %1660 = vxpose.xlu1.b32.end [4/4] (short) (narrow) %v1616_v37, 8  ;;  %v1578_v43 = vadd.f32 %v2965_v2, %v1562_v35 }
 0x2a5   : > { %v1451_v32 = vpop.trf.xlu0 }
 0x2a6   : > { %v1793_v44 = vsel %vm505_vm1, %v1578_v43, %v2912_v54  ;;  %v1563_v33 = vadd.f32 %v1451_v32, %v2932_v60 }
 0x2a7   : > { %1810 = vst.msk [vmem:[%s3029_s12 + $0x8] sm:$0xff] %vm1808_vm4, %v1793_v44 }
 0x2a8   : > { %v1579_v45 = vadd.f32 %v1563_v33, %v2971_v11 }
 0x2a9   : > { %v1481_v46 = vpop.trf.xlu1  ;;  %v1452_v48 = vpop.trf.xlu0 }
 0x2aa   : > { %v1565_v47 = vadd.f32 %v1481_v46, %v2922_v57  ;;  %v1794_v49 = vsel %vm505_vm1, %v1579_v45, %v2932_v60  ;;  %v1564_v39 = vadd.f32 %v2928_v58, %v1452_v48 }
 0x2ab   : > { %1811 = vst.msk [vmem:[%s3029_s12 + $0x10] sm:$0xff] %vm1808_vm4, %v1794_v49 }
 0x2ac   : > { %v1581_v40 = vadd.f32 %v1565_v47, %v2977_v4  ;;  %v1580_v50 = vadd.f32 %v2969_v10, %v1564_v39 }
 0x2ad   : > { %v1482_v51 = vpop.trf.xlu1 }
 0x2ae   : > { %v1796_v52 = vsel %vm505_vm1, %v1581_v40, %v2922_v57  ;;  %v1566_v53 = vadd.f32 %v2914_v55, %v1482_v51  ;;  %v1795_v54 = vsel %vm505_vm1, %v1580_v50, %v2928_v58 }
 0x2af   : > { %1813 = vst.msk [vmem:[%s3029_s12 + $0x28] sm:$0xff] %vm1808_vm4, %v1796_v52  ;;  %1812 = vst.msk [vmem:[%s3029_s12 + $0x18] sm:$0xff] %vm1808_vm4, %v1795_v54 }
 0x2b0   : > { %v1582_v56 = vadd.f32 %v2975_v12, %v1566_v53 }
 0x2b1   : > { %v1483_v60 = vpop.trf.xlu1 }
 0x2b2   : > { %v1797_v2 = vsel %vm505_vm1, %v1582_v56, %v2914_v55  ;;  %v1567_v3 = vadd.f32 %v1483_v60, %v2938_v61 }
 0x2b3   : > { %1814 = vst.msk [vmem:[%s3029_s12 + $0x30] sm:$0xff] %vm1808_vm4, %v1797_v2 }
 0x2b4   : > { %v1583_v57 = vadd.f32 %v1567_v3, %v2983_v13 }
 0x2b5   : > { %v1484_v10 = vpop.trf.xlu1 }
 0x2b6   : > { %v1798_v58 = vsel %vm505_vm1, %v1583_v57, %v2938_v61  ;;  %v1568_v11 = vadd.f32 %v2930_v59, %v1484_v10 }
 0x2b7   : > { %1815 = vst.msk [vmem:[%s3029_s12 + $0x38] sm:$0xff] %vm1808_vm4, %v1798_v58 }
 0x2b8   : > { %v1584_v12 = vadd.f32 %v2981_v5, %v1568_v11 }
 0x2ba   : > { %v1799_v4 = vsel %vm505_vm1, %v1584_v12, %v2930_v59 }
 0x2bb   : > { %1816 = vst.msk [vmem:[%s3029_s12 + $0x40] sm:$0xff] %vm1808_vm4, %v1799_v4 }
 0x2c4   : > { %v1640_v13 = vpop.permute.xlu0 %1639 }
 0x2c5   : > { %v1626_v55 = vpop.permute.xlu1 %1625 }
 0x2c6   : > { %1721 = vxpose.xlu0.b32.start [1/4] (short) (narrow) %v1626_v55, 8 }
 0x2c8   : > { %v1638_v61 = vpop.permute.xlu0 %1637 }
 0x2c9   : > { %v1634_v17 = vpop.permute.xlu1 %1633 }
 0x2ca   : > { %1753 = vxpose.xlu1.b32.start [1/4] (short) (narrow) %v1634_v17, 8  ;;  %1722 = vxpose.xlu0.b32.cont [2/4] (short) (narrow) %v1628_v42, 8 }
 0x2cd   : > { %v1632_v18 = vpop.permute.xlu1 %1631 }
 0x2ce   : > { %1754 = vxpose.xlu1.b32.cont [2/4] (short) (narrow) %v1636_v28, 8 }
 0x2d1   : > { %v1630_v23 = vpop.permute.xlu1 %1629 }
 0x2d2   : > { %1723 = vxpose.xlu0.b32.cont [3/4] (short) (narrow) %v1630_v23, 8  ;;  %1755 = vxpose.xlu1.b32.cont [3/4] (short) (narrow) %v1638_v61, 8 }
 0x2d6   : > { %1724 = vxpose.xlu0.b32.end [4/4] (short) (narrow) %v1632_v18, 8  ;;  %1756 = vxpose.xlu1.b32.end [4/4] (short) (narrow) %v1640_v13, 8 }
 0x2f4   : > { %v1513_v5 = vpop.trf.xlu0 }
 0x2f5   : > { %v1569_v59 = vadd.f32 %v1513_v5, %v2948_v0 }
 0x2f7   : > { %v1585_v24 = vadd.f32 %v1569_v59, %v3003_v16 }
 0x2f8   : > { %v1514_v25 = vpop.trf.xlu0 }
 0x2f9   : > { %v1800_v27 = vsel %vm505_vm1, %v1585_v24, %v2948_v0  ;;  %v1570_v37 = vadd.f32 %v2944_v62, %v1514_v25 }
 0x2fa   : > { %1817 = vst.msk [vmem:[%s3029_s12 + $0x50] sm:$0xff] %vm1808_vm4, %v1800_v27 }
 0x2fb   : > { %v1586_v28 = vadd.f32 %v3001_v15, %v1570_v37 }
 0x2fc   : > { %v1515_v29 = vpop.trf.xlu0 }
 0x2fd   : > { %v1801_v38 = vsel %vm505_vm1, %v1586_v28, %v2944_v62  ;;  %v1571_v41 = vadd.f32 %v1515_v29, %v2962_v9 }
 0x2fe   : > { %1818 = vst.msk [vmem:[%s3029_s12 + $0x58] sm:$0xff] %vm1808_vm4, %v1801_v38 }
 0x2ff   : > { %v1587_v16 = vadd.f32 %v1571_v41, %v3009_v22 }
 0x300   : > { %v1516_v30 = vpop.trf.xlu0 }
 0x301   : > { %v1802_v0 = vsel %vm505_vm1, %v1587_v16, %v2962_v9  ;;  %v1572_v31 = vadd.f32 %v2958_v7, %v1516_v30 }
 0x302   : > { %1819 = vst.msk [vmem:[%s3029_s12 + $0x60] sm:$0xff] %vm1808_vm4, %v1802_v0 }
 0x303   : > { %v1588_v15 = vadd.f32 %v3007_v19, %v1572_v31 }
 0x304   : > { %v1705_v34 = vpop.trf.xlu0 }
 0x305   : > { %v1803_v62 = vsel %vm505_vm1, %v1588_v15, %v2958_v7  ;;  %v1830_v35 = vsel %vm505_vm1, %v1705_v34, %v2999_v14 }
 0x306   : > { %1820 = vst.msk [vmem:[%s3029_s12 + $0x68] sm:$0xff] %vm1808_vm4, %v1803_v62  ;;  %1834 = vst.msk [vmem:[%s3029_s12 + $0x48] sm:$0xff] %vm1808_vm4, %v1830_v35 }
 0x308   : > { %v1545_v22 = vpop.trf.xlu1 }
 0x309   : > { %v1573_v9 = vadd.f32 %v1545_v22, %v2954_v1 }
 0x30b   : > { %v1589_v42 = vadd.f32 %v1573_v9, %v3015_v20 }
 0x30c   : > { %v1546_v43 = vpop.trf.xlu1 }
 0x30d   : > { %v1804_v19 = vsel %vm505_vm1, %v1589_v42, %v2954_v1  ;;  %v1574_v32 = vadd.f32 %v2946_v63, %v1546_v43 }
 0x30e   : > { %1821 = vst.msk [vmem:[%s3029_s12 + $0x78] sm:$0xff] %vm1808_vm4, %v1804_v19 }
 0x30f   : > { %v1590_v7 = vadd.f32 %v3013_v26, %v1574_v32 }
 0x310   : > { %v1547_v44 = vpop.trf.xlu1 }
 0x311   : > { %v1805_v33 = vsel %vm505_vm1, %v1590_v7, %v2946_v63  ;;  %v1575_v20 = vadd.f32 %v1547_v44, %v2960_v8 }
 0x312   : > { %1822 = vst.msk [vmem:[%s3029_s12 + $0x80] sm:$0xff] %vm1808_vm4, %v1805_v33 }
 0x313   : > { %v1591_v1 = vadd.f32 %v1575_v20, %v3021_v36 }
 0x314   : > { %v1548_v45 = vpop.trf.xlu1 }
 0x315   : > { %v1806_v46 = vsel %vm505_vm1, %v1591_v1, %v2960_v8  ;;  %v1576_v47 = vadd.f32 %v2956_v6, %v1548_v45 }
 0x316   : > { %1823 = vst.msk [vmem:[%s3029_s12 + $0x88] sm:$0xff] %vm1808_vm4, %v1806_v46 }
 0x317   : > { %v1592_v26 = vadd.f32 %v3019_v21, %v1576_v47 }
 0x318   : > { %v1673_v63 = vpop.trf.xlu1 }
 0x319   : > { %v1807_v48 = vsel %vm505_vm1, %v1592_v26, %v2956_v6  ;;  %v1829_v36 = vsel %vm505_vm1, %v1673_v63, %v2999_v14 }
 0x31a   : > { %1824 = vst.msk [vmem:[%s3029_s12 + $0x90] sm:$0xff] %vm1808_vm4, %v1807_v48  ;;  %1833 = vst.msk [vmem:[%s3029_s12 + $0x20] sm:$0xff] %vm1808_vm4, %v1829_v36 }
 0x34a   : > { %v1769_v6 = vpop.trf.xlu1  ;;  %v1737_v8 = vpop.trf.xlu0 }
 0x34b   : > { %v1832_v21 = vsel %vm505_vm1, %v1769_v6, %v2999_v14  ;;  %v1831_v49 = vsel %vm505_vm1, %v1737_v8, %v2999_v14 }
 0x34c   : > { %1836 = vst.msk [vmem:[%s3029_s12 + $0x98] sm:$0xff] %vm1808_vm4, %v1832_v21  ;;  %1835 = vst.msk [vmem:[%s3029_s12 + $0x70] sm:$0xff] %vm1808_vm4, %v1831_v49 }
 0x34d   : > { %2413 = shalt.err (!%p2410_p1)
}
 0x34e   : > { %s2414_s7 = scalar_lea.hbm %s3135_s20, 2560  ;;  %s2418_s17 = scalar_lea.hbm %s3193_s4, 5120 }
 0x34f   : > { %p2415_p7 = scmp.ne.s32.totalorder %s3135_s20, %s2414_s7  ;;  %p2419_p5 = scmp.lt.u32.totalorder %s3135_s20, %s3193_s4 }
 0x350   : > { %p2420_p2 = scmp.lt.u32.totalorder %s2418_s17, %s2414_s7  ;;  %p2422_p12 = scmp.lt.u32.totalorder %s2414_s7, %s3135_s20 }
 0x351   : > { %p2416_p11 = pnand %p2415_p7, %p3217_p0 }
 0x352   : > { %p2421_p6 = por %p2420_p2, %p2419_p5 }
 0x353   : > { %p2417_p8 = pneg %p2416_p11 }
 0x354   : > { %p2423_p10 = por %p2422_p12, %p2421_p6 }
 0x356   : > { %p2424_p13 = pnand %p2423_p10, %p2417_p8 }
 0x358   : > { %2427 = shalt.err (!%p2424_p13)
}
 0x359   : > { %s2487_s13 = smov 128   ;;  %s2488_s14 = smov 8  }
 0x35a   : > { %2231 = dma.vmem_to_hbm [thread:$0]  (%p3217_p0), %s3137_s22, 2560, %s3135_s20, %s1838_s29, %s2487_s13, %s2487_s13, %s2488_s14  }
 0x35b PF: > { %s1867_s21 = sand.u32 1, %s2462_s15   ;;  %p3218_p4 = scmp.ne.s32.totalorder %s3210_s6, 0 }
 0x35c   : > { %p3219_p9 = scmp.ge.s32.totalorder %s2474_s18, 2  ;;  %s1868_s25 = scalar_lea.sflag [#allocation4], %s1867_s21 }
 0x35e   : > { %p2248_p3 = pnand %p3219_p9, %p3218_p4 }
 0x360   : > { %2457 = dma.done.wait (!%p2248_p3), %s1868_s25, 2560  }
 0x361   : > { %2459 = vsyncadd (!%p2248_p3), %s1868_s25, 4294964736  ;;  %s3220_s12 = sld [smem:[#allocation15_spill]]  ;;  %s3221_s17 = sld [smem:[#allocation16_spill]] }
 0x362   : > { %p21_p1 = scmp.ge.s32.totalorder %s2535_s19, 4   ;;  %s3222_s15 = smov %s2466_s16 }
 0x363   : > { %s3224_s18 = smov %s2535_s19 }
 0x364   :  { %23 = sbr.rel (!%p21_p1) target bundleno = 11 (0xb), region = 110 }
 0x367   : > { %s3223_s16 = smov %s3220_s12 }
 0x36b   :  { %1873 = vsyncpa [#allocation3], 1 }
 0x36c   :  { %1875 = vsyncpa [#allocation3 + $0x1], 1 }
 0x36d   :  { %1876 = vsyncpa [#allocation8], 1 }
 0x36e   :  { %1878 = vsyncpa [#allocation8 + $0x1], 1 }
 0x36f   :  { %1879 = vsyncpa [#allocation4], 1 }
 0x370   :  { %1881 = vsyncpa [#allocation4 + $0x1], 1 }
 0x371   :  { %1882 = vsyncpa [#allocation5], 1 }
 0x372   :  { %1884 = vsyncpa [#allocation5 + $0x1], 1 }

</bundles_post_ra>
